<compile_context>
chip_gen: v7x
topology: tpu7x:2x2x1
jax: 0.10.0
libtpu: 0.0.40
codegen_flags: <defaults>
</compile_context>

<pallas_src>
import functools

import jax
import jax.numpy as jnp
import numpy as np
from jax.experimental import pallas as pl
from jax.experimental.pallas import tpu as pltpu

INPUT_DIM = 74          # module constant
E_CH = 32               # shrunk from 128 for a small, fast demo
H_K_SZS = (2, 2, 2, 3, 1, 1)
H_DILS = (1, 2, 4, 8, 1, 1)
MAX_K = max(H_K_SZS)
IN_PAD = 80             # 74 padded to a multiple of 16 (bf16 sublane tile)


def _live_shifts(T):
    """Per-layer (tap_index, causal_shift) pairs that touch real data (s < T)."""
    out = []
    for k, d in zip(H_K_SZS, H_DILS):
        shifts = [(k - 1 - j) * d for j in range(k)]
        out.append(tuple((j, s) for j, s in enumerate(shifts) if s < T))
    return tuple(out)


def _slab_layout(live, e=E_CH):
    """Static row offsets of each weight chunk inside the packed bf16 slab."""
    offs = {}
    r = 0
    offs["front"] = r; r += IN_PAD
    hw = []
    for taps in live:
        hw.append(r); r += len(taps) * e
    offs["hw"] = tuple(hw)
    offs["mid1"] = r; r += e
    offs["mid2"] = r; r += e
    offs["cls"] = r; r += 8          # 1 row used, padded to 8 (sublane align)
    offs["total"] = r
    return offs


def _use_per_tap_acc():
    """v7x MRB accumulates matmul results in place -> per-tap dots are cheap."""
    try:
        kind = jax.devices()[0].device_kind.lower()
    except Exception:
        return False
    return ("v7" in kind) or ("7x" in kind)


def _pick_bblk(B, T):
    # Target ~2048 rows per grid step (amortise ~0.35us/step + MXU drain),
    # but keep >= 2 grid steps when B >= 2 so both v7x TensorCores are used.
    bblk = max(1, min(B, max(1, 2048 // max(T, 1))))
    if B >= 2 and -(-B // bblk) < 2:
        bblk = -(-B // 2)
    mult = 8 // int(np.gcd(T, 8))        # keep bblk*T a multiple of 8
    bblk = -(-bblk // mult) * mult
    return bblk


# ----------------------------- Pallas kernel ------------------------------ #
def _make_kernel(T, live, offs, e, per_tap_acc):
    shift_lists = tuple(tuple(s for _, s in taps) for taps in live)
    distinct = tuple(sorted({s for taps in shift_lists for s in taps if s > 0}))
    two_e = 2 * e
    n_layers = len(shift_lists)

    def kernel(x_ref, w_ref, b_ref, out_ref):
        BT = x_ref.shape[0]                       # = bblk * T (flattened rows)

        x = x_ref[...]                                                # (BT, IN_PAD) bf16

        # front 1x1 conv == one big matmul + bias (f32 accumulate)
        w_front = w_ref[offs["front"]:offs["front"] + IN_PAD, :e]
        h = jnp.dot(x, w_front,
                    preferred_element_type=jnp.float32) + b_ref[0:1, :e]   # (BT,E) f32

        # hoisted causal masks: one compare per distinct shift, reused by all taps.
        # Mask also zeroes rows that rolled across a batch boundary.
        t_idx = jax.lax.broadcasted_iota(jnp.int32, (BT, e), 0) % T
        masks = {s: t_idx >= s for s in distinct}

        # Highway dilated-causal conv block (6 layers, statically unrolled).
        for l in range(n_layers):
            shifts = shift_lists[l]
            woff = offs["hw"][l]
            taps = []
            for s in shifts:
                if s == 0:
                    xs = h
                else:
                    # causal shift: xs[t] = h[t-s], zero for t < s
                    xs = jnp.where(masks[s], pltpu.roll(h, s, 0), 0.0)
                taps.append(xs.astype(jnp.bfloat16))

            if per_tap_acc and len(taps) > 1:
                # v7x: accumulate per-tap dots (MRB), skip the lane-concat (XLU).
                acc = jnp.dot(taps[0], w_ref[woff:woff + e, :two_e],
                              preferred_element_type=jnp.float32)
                for j in range(1, len(taps)):
                    wj = w_ref[woff + j * e:woff + (j + 1) * e, :two_e]
                    acc = acc + jnp.dot(taps[j], wj,
                                        preferred_element_type=jnp.float32)
            else:
                # v5e/v6e: fuse the k taps into ONE matmul on lane-concatenated input.
                xcat = taps[0] if len(taps) == 1 else jnp.concatenate(taps, axis=1)
                wcat = w_ref[woff:woff + len(taps) * e, :two_e]
                acc = jnp.dot(xcat, wcat, preferred_element_type=jnp.float32)

            acc = acc + b_ref[1 + l:2 + l, :two_e]                     # (BT, 2E)
            g = jax.nn.sigmoid(acc[:, :e])
            h = h + g * (acc[:, e:] - h)                               # highway blend

        # mid 1x1 convs + ReLU
        w1 = w_ref[offs["mid1"]:offs["mid1"] + e, :e]
        w2 = w_ref[offs["mid2"]:offs["mid2"] + e, :e]
        h = jnp.maximum(jnp.dot(h.astype(jnp.bfloat16), w1,
                                preferred_element_type=jnp.float32)
                        + b_ref[7:8, :e], 0.0)
        h = jnp.maximum(jnp.dot(h.astype(jnp.bfloat16), w2,
                                preferred_element_type=jnp.float32)
                        + b_ref[8:9, :e], 0.0)

        # classifier (w_last folded in): lane-dense (1, BT) row via an NT dot
        # (1,E) x (BT,E)^T.  Lane-dense output layout kept per review.
        wc = w_ref[offs["cls"]:offs["cls"] + 1, :e]
        y = jax.lax.dot_general(wc, h.astype(jnp.bfloat16),
                                (((1,), (1,)), ((), ())),
                                preferred_element_type=jnp.float32)    # (1, BT)
        out_ref[0] = y + b_ref[9:10, 0:1]

    return kernel


# ------------------------------- wrapper ----------------------------------- #
@functools.partial(jax.jit, static_argnums=(2,))
def _forward_impl(x_ncl, params, bblk):
    B, IN, T = x_ncl.shape
    E = params["w_front"].shape[1]
    lanes = 2 * E

    nblocks = -(-B // bblk)
    b_pad = nblocks * bblk
    BT = bblk * T

    # (B, IN, T) -> (B_pad*T, IN_PAD): time on sublanes, channels on lanes, bf16.
    # TODO(synk): if upstream can provide (B, T, C) bf16 activations, drop this
    # transpose/pad/cast chain entirely (it fuses under jit, but still costs a pass).
    x = jnp.transpose(x_ncl, (0, 2, 1)).astype(jnp.float32)           # (B, T, IN)
    x = jnp.pad(x, ((0, b_pad - B), (0, 0), (0, IN_PAD - IN)))
    x2d = x.reshape(b_pad * T, IN_PAD).astype(jnp.bfloat16)

    p = params
    live = _live_shifts(T)
    offs = _slab_layout(live, E)

    # fold last 1x1 conv into the classifier (exact algebraic identity, f32)
    w_cls_fused = (p["w_last"] @ p["w_cls"]).T                        # (1, E)
    b_cls_fused = p["b_last"] @ p["w_cls"] + p["b_cls"]               # (1, 1)

    # ---- packed bf16 weight slab (lane width 2E = 64) ----
    pieces = [jnp.pad(p["w_front"], ((0, IN_PAD - IN), (0, lanes - E)))]
    for l in range(len(H_K_SZS)):
        pieces.append(jnp.concatenate([p["hw_w"][l, j] for j, _ in live[l]],
                                      axis=0))                        # (kE, 2E)
    pieces.append(jnp.pad(p["w_mid1"], ((0, 0), (0, lanes - E))))
    pieces.append(jnp.pad(p["w_mid2"], ((0, 0), (0, lanes - E))))
    pieces.append(jnp.pad(w_cls_fused, ((0, 7), (0, lanes - E))))
    w_slab = jnp.concatenate(pieces, axis=0).astype(jnp.bfloat16)     # (offs["total"], 2E)

    # ---- packed f32 bias slab: rows = [front, hw0..hw5, mid1, mid2, cls] ----
    brows = [jnp.pad(p["b_front"], ((0, 0), (0, lanes - E)))]
    for l in range(len(H_K_SZS)):
        brows.append(p["hw_b"][l])                                    # (1, 2E)
    brows.append(jnp.pad(p["b_mid1"], ((0, 0), (0, lanes - E))))
    brows.append(jnp.pad(p["b_mid2"], ((0, 0), (0, lanes - E))))
    brows.append(jnp.pad(b_cls_fused, ((0, 0), (0, lanes - 1))))
    b_slab = jnp.concatenate(brows, axis=0).astype(jnp.float32)       # (10, 2E)

    kernel = _make_kernel(T, live, offs, E, _use_per_tap_acc())

    out = pl.pallas_call(
        kernel,
        out_shape=jax.ShapeDtypeStruct((nblocks, 1, BT), jnp.float32),
        grid=(nblocks,),
        in_specs=[
            pl.BlockSpec((BT, IN_PAD), lambda b: (b, 0)),
            pl.BlockSpec(w_slab.shape, lambda b: (0, 0)),
            pl.BlockSpec(b_slab.shape, lambda b: (0, 0)),
        ],
        out_specs=pl.BlockSpec((1, 1, BT), lambda b: (b, 0, 0)),
        # BT<=2048 -> working set far below default scoped VMEM on all gens;
        # set vmem_limit_bytes only if BT is pushed past ~8192 on v5e.
        compiler_params=pltpu.CompilerParams(
            dimension_semantics=("parallel",)),
    )(x2d, w_slab, b_slab)
    return out.reshape(b_pad, T)[:B]          # == classifier(...).squeeze(1)


def seqmodel_forward(x_ncl, params, *, bblk=None):
    """x_ncl: (B, INPUT_DIM, T) float32, PyTorch NCL layout.  Returns (B, T)."""
    B, _, T = x_ncl.shape
    if bblk is None:
        bblk = _pick_bblk(B, T)
    return _forward_impl(x_ncl, params, int(bblk))


# ---------------------- deterministic parameter init ----------------------- #
def init_params(key, input_dim=INPUT_DIM, e_ch=E_CH):
    ks = jax.random.split(key, 12)

    def w(k, shape, fan_in):
        lim = 1.0 / float(np.sqrt(fan_in))
        return jax.random.uniform(k, shape, jnp.float32, -lim, lim)

    # highway weights padded to MAX_K taps; unused taps stay zero (never read)
    hw_w = jnp.zeros((len(H_K_SZS), MAX_K, e_ch, 2 * e_ch), jnp.float32)
    hw_b = jnp.zeros((len(H_K_SZS), 1, 2 * e_ch), jnp.float32)
    kk = jax.random.split(ks[0], 2 * len(H_K_SZS))
    for l, ksz in enumerate(H_K_SZS):
        fan = e_ch * ksz
        hw_w = hw_w.at[l, :ksz].set(w(kk[2 * l], (ksz, e_ch, 2 * e_ch), fan))
        hw_b = hw_b.at[l].set(w(kk[2 * l + 1], (1, 2 * e_ch), fan))

    return dict(
        w_front=w(ks[1], (input_dim, e_ch), input_dim),
        b_front=w(ks[2], (1, e_ch), input_dim),
        hw_w=hw_w, hw_b=hw_b,
        w_mid1=w(ks[3], (e_ch, e_ch), e_ch), b_mid1=w(ks[4], (1, e_ch), e_ch),
        w_mid2=w(ks[5], (e_ch, e_ch), e_ch), b_mid2=w(ks[6], (1, e_ch), e_ch),
        w_last=w(ks[7], (e_ch, e_ch), e_ch), b_last=w(ks[8], (1, e_ch), e_ch),
        w_cls=w(ks[9], (e_ch, 1), e_ch), b_cls=w(ks[10], (1, 1), e_ch),
    )


# ------------------------- pure-JAX reference ------------------------------ #
def seqmodel_ref(x_ncl, params):
    x = jnp.transpose(x_ncl, (0, 2, 1)).astype(jnp.float32)          # (B, T, IN)
    B, T, _ = x.shape
    E = params["w_front"].shape[1]
    h = x @ params["w_front"] + params["b_front"]
    for l, (k, dil) in enumerate(zip(H_K_SZS, H_DILS)):
        acc = jnp.zeros((B, T, 2 * E), jnp.float32)
        for j in range(k):
            s = (k - 1 - j) * dil
            xs = h if s == 0 else jnp.pad(h, ((0, 0), (s, 0), (0, 0)))[:, :T, :]
            acc = acc + xs @ params["hw_w"][l, j]
        acc = acc + params["hw_b"][l]
        h1, h2 = acc[..., :E], acc[..., E:]
        g = jax.nn.sigmoid(h1)
        h = g * h2 + (1.0 - g) * h
    h = jnp.maximum(h @ params["w_mid1"] + params["b_mid1"], 0.0)
    h = jnp.maximum(h @ params["w_mid2"] + params["b_mid2"], 0.0)
    h = h @ params["w_last"] + params["b_last"]
    y = h @ params["w_cls"] + params["b_cls"]
    return y[..., 0]


# --------------------------------- main ------------------------------------ #
if __name__ == "__main__":
    key = jax.random.PRNGKey(0)
    pkey, xkey = jax.random.split(key)
    params = init_params(pkey)

    B, T = 2, 16
    x = jax.random.normal(xkey, (B, INPUT_DIM, T), jnp.float32)      # NCL input

    out = jax.block_until_ready(seqmodel_forward(x, params))
    assert out.shape == (B, T)

    ref = seqmodel_ref(x, params)
    # bf16 MXU matmuls vs f32 reference -> loose tolerance
    np.testing.assert_allclose(np.asarray(out), np.asarray(ref),
                               rtol=2e-2, atol=2e-2)
    print("KERNEL_OK")
</pallas_src>

<mosaic_0001>
module attributes {stable_mosaic.version = 11 : i64} {
  func.func @kernel(%arg0: i32, %arg1: memref<16x80xbf16, #tpu.memory_space<vmem>>, %arg2: memref<472x64xbf16, #tpu.memory_space<vmem>>, %arg3: memref<10x64xf32, #tpu.memory_space<vmem>>, %arg4: memref<1x1x16xf32, #tpu.memory_space<vmem>>) attributes {dimension_semantics = [#tpu.dimension_semantics<parallel>], iteration_bounds = array<i64: 2>, scalar_prefetch = 0 : i64, scratch_operands = 0 : i64, tpu.core_type = #tpu.core_type<tc>, window_params = [{transform_indices = @transform_0, window_bounds = array<i64: 16, 80>}, {pipeline_mode = #tpu.pipeline_mode<synchronous>, transform_indices = @transform_1, window_bounds = array<i64: 472, 64>}, {pipeline_mode = #tpu.pipeline_mode<synchronous>, transform_indices = @transform_2, window_bounds = array<i64: 10, 64>}, {transform_indices = @transform_3, window_bounds = array<i64: 1, 1, 16>}]} {
    %c0 = arith.constant 0 : index
    %c0_0 = arith.constant 0 : index
    %0 = vector.load %arg1[%c0, %c0_0] : memref<16x80xbf16, #tpu.memory_space<vmem>>, vector<16x80xbf16>
    %c0_1 = arith.constant 0 : index
    %c0_2 = arith.constant 0 : index
    %1 = vector.load %arg2[%c0_1, %c0_2] : memref<472x64xbf16, #tpu.memory_space<vmem>>, vector<80x32xbf16>
    %cst = arith.constant dense<0.000000e+00> : vector<16x32xf32>
    %2 = tpu.matmul %0, %1, %cst {dimension_numbers = #tpu.dot_dimension_numbers<[1], [0], [0], [1], [0, 0, 1, 1], [], []>} : vector<16x80xbf16>, vector<80x32xbf16>, vector<16x32xf32> -> vector<16x32xf32>
    %c0_3 = arith.constant 0 : index
    %c0_4 = arith.constant 0 : index
    %3 = vector.load %arg3[%c0_3, %c0_4] : memref<10x64xf32, #tpu.memory_space<vmem>>, vector<1x32xf32>
    %4 = vector.broadcast %3 : vector<1x32xf32> to vector<16x32xf32>
    %5 = arith.addf %2, %4 : vector<16x32xf32>
    %6 = tpu.iota {dimensions = array<i32: 0>} : vector<16x32xi32>
    %c16_i32 = arith.constant 16 : i32
    %c0_i32 = arith.constant 0 : i32
    %7 = arith.cmpi eq, %c16_i32, %c0_i32 : i32
    %c1_i32 = arith.constant 1 : i32
    %8 = arith.select %7, %c1_i32, %c16_i32 : i32
    %9 = vector.broadcast %8 : i32 to vector<16x32xi32>
    %10 = arith.remsi %6, %9 : vector<16x32xi32>
    %c0_i32_5 = arith.constant 0 : i32
    %11 = vector.broadcast %c0_i32_5 : i32 to vector<16x32xi32>
    %12 = arith.cmpi ne, %10, %11 : vector<16x32xi32>
    %c0_i32_6 = arith.constant 0 : i32
    %13 = vector.broadcast %c0_i32_6 : i32 to vector<16x32xi32>
    %14 = arith.cmpi slt, %10, %13 : vector<16x32xi32>
    %c0_i32_7 = arith.constant 0 : i32
    %15 = arith.cmpi slt, %8, %c0_i32_7 : i32
    %16 = vector.broadcast %15 : i1 to vector<16x32xi1>
    %17 = vector.broadcast %16 : vector<16x32xi1> to vector<16x32xi1>
    %18 = arith.xori %14, %17 : vector<16x32xi1>
    %19 = arith.andi %18, %12 : vector<16x32xi1>
    %20 = vector.broadcast %8 : i32 to vector<16x32xi32>
    %21 = arith.addi %10, %20 : vector<16x32xi32>
    %22 = arith.select %19, %21, %10 : vector<16x32xi1>, vector<16x32xi32>
    %c1_i32_8 = arith.constant 1 : i32
    %23 = vector.broadcast %c1_i32_8 : i32 to vector<16x32xi32>
    %24 = arith.cmpi sge, %22, %23 : vector<16x32xi32>
    %c2_i32 = arith.constant 2 : i32
    %25 = vector.broadcast %c2_i32 : i32 to vector<16x32xi32>
    %26 = arith.cmpi sge, %22, %25 : vector<16x32xi32>
    %c4_i32 = arith.constant 4 : i32
    %27 = vector.broadcast %c4_i32 : i32 to vector<16x32xi32>
    %28 = arith.cmpi sge, %22, %27 : vector<16x32xi32>
    %c8_i32 = arith.constant 8 : i32
    %29 = vector.broadcast %c8_i32 : i32 to vector<16x32xi32>
    %30 = arith.cmpi sge, %22, %29 : vector<16x32xi32>
    %c1_i32_9 = arith.constant 1 : i32
    %31 = tpu.dynamic_rotate %5 by %c1_i32_9 dim 0 : vector<16x32xf32>, i32 -> vector<16x32xf32>
    %cst_10 = arith.constant 0.000000e+00 : f32
    %32 = vector.broadcast %cst_10 : f32 to vector<16x32xf32>
    %33 = arith.select %24, %31, %32 : vector<16x32xi1>, vector<16x32xf32>
    %34 = arith.truncf %33 : vector<16x32xf32> to vector<16x32xbf16>
    %35 = arith.truncf %5 : vector<16x32xf32> to vector<16x32xbf16>
    %36 = tpu.concatenate %34, %35 in 1 : vector<16x32xbf16>, vector<16x32xbf16> -> vector<16x64xbf16>
    %c80 = arith.constant 80 : index
    %c0_11 = arith.constant 0 : index
    %37 = vector.load %arg2[%c80, %c0_11] : memref<472x64xbf16, #tpu.memory_space<vmem>>, vector<64x64xbf16>
    %cst_12 = arith.constant dense<0.000000e+00> : vector<16x64xf32>
    %38 = tpu.matmul %36, %37, %cst_12 {dimension_numbers = #tpu.dot_dimension_numbers<[1], [0], [0], [1], [0, 0, 1, 1], [], []>} : vector<16x64xbf16>, vector<64x64xbf16>, vector<16x64xf32> -> vector<16x64xf32>
    %c1 = arith.constant 1 : index
    %c0_13 = arith.constant 0 : index
    %39 = vector.load %arg3[%c1, %c0_13] : memref<10x64xf32, #tpu.memory_space<vmem>>, vector<1x64xf32>
    %40 = vector.broadcast %39 : vector<1x64xf32> to vector<16x64xf32>
    %41 = arith.addf %38, %40 : vector<16x64xf32>
    %42 = vector.extract_strided_slice %41 {offsets = [0, 0], sizes = [16, 32], strides = [1, 1]} : vector<16x64xf32> to vector<16x32xf32>
    %43 = arith.negf %42 : vector<16x32xf32>
    %44 = math.exp %43 : vector<16x32xf32>
    %cst_14 = arith.constant 1.000000e+00 : f32
    %45 = vector.broadcast %cst_14 : f32 to vector<16x32xf32>
    %46 = arith.addf %45, %44 : vector<16x32xf32>
    %47 = arith.divf %45, %46 : vector<16x32xf32>
    %48 = vector.extract_strided_slice %41 {offsets = [0, 32], sizes = [16, 32], strides = [1, 1]} : vector<16x64xf32> to vector<16x32xf32>
    %49 = arith.subf %48, %5 : vector<16x32xf32>
    %50 = arith.mulf %47, %49 : vector<16x32xf32>
    %51 = arith.addf %5, %50 : vector<16x32xf32>
    %c2_i32_15 = arith.constant 2 : i32
    %52 = tpu.dynamic_rotate %51 by %c2_i32_15 dim 0 : vector<16x32xf32>, i32 -> vector<16x32xf32>
    %cst_16 = arith.constant 0.000000e+00 : f32
    %53 = vector.broadcast %cst_16 : f32 to vector<16x32xf32>
    %54 = arith.select %26, %52, %53 : vector<16x32xi1>, vector<16x32xf32>
    %55 = arith.truncf %54 : vector<16x32xf32> to vector<16x32xbf16>
    %56 = arith.truncf %51 : vector<16x32xf32> to vector<16x32xbf16>
    %57 = tpu.concatenate %55, %56 in 1 : vector<16x32xbf16>, vector<16x32xbf16> -> vector<16x64xbf16>
    %c144 = arith.constant 144 : index
    %c0_17 = arith.constant 0 : index
    %58 = vector.load %arg2[%c144, %c0_17] : memref<472x64xbf16, #tpu.memory_space<vmem>>, vector<64x64xbf16>
    %cst_18 = arith.constant dense<0.000000e+00> : vector<16x64xf32>
    %59 = tpu.matmul %57, %58, %cst_18 {dimension_numbers = #tpu.dot_dimension_numbers<[1], [0], [0], [1], [0, 0, 1, 1], [], []>} : vector<16x64xbf16>, vector<64x64xbf16>, vector<16x64xf32> -> vector<16x64xf32>
    %c2 = arith.constant 2 : index
    %c0_19 = arith.constant 0 : index
    %60 = vector.load %arg3[%c2, %c0_19] : memref<10x64xf32, #tpu.memory_space<vmem>>, vector<1x64xf32>
    %61 = vector.broadcast %60 : vector<1x64xf32> to vector<16x64xf32>
    %62 = arith.addf %59, %61 : vector<16x64xf32>
    %63 = vector.extract_strided_slice %62 {offsets = [0, 0], sizes = [16, 32], strides = [1, 1]} : vector<16x64xf32> to vector<16x32xf32>
    %64 = arith.negf %63 : vector<16x32xf32>
    %65 = math.exp %64 : vector<16x32xf32>
    %cst_20 = arith.constant 1.000000e+00 : f32
    %66 = vector.broadcast %cst_20 : f32 to vector<16x32xf32>
    %67 = arith.addf %66, %65 : vector<16x32xf32>
    %68 = arith.divf %66, %67 : vector<16x32xf32>
    %69 = vector.extract_strided_slice %62 {offsets = [0, 32], sizes = [16, 32], strides = [1, 1]} : vector<16x64xf32> to vector<16x32xf32>
    %70 = arith.subf %69, %51 : vector<16x32xf32>
    %71 = arith.mulf %68, %70 : vector<16x32xf32>
    %72 = arith.addf %51, %71 : vector<16x32xf32>
    %c4_i32_21 = arith.constant 4 : i32
    %73 = tpu.dynamic_rotate %72 by %c4_i32_21 dim 0 : vector<16x32xf32>, i32 -> vector<16x32xf32>
    %cst_22 = arith.constant 0.000000e+00 : f32
    %74 = vector.broadcast %cst_22 : f32 to vector<16x32xf32>
    %75 = arith.select %28, %73, %74 : vector<16x32xi1>, vector<16x32xf32>
    %76 = arith.truncf %75 : vector<16x32xf32> to vector<16x32xbf16>
    %77 = arith.truncf %72 : vector<16x32xf32> to vector<16x32xbf16>
    %78 = tpu.concatenate %76, %77 in 1 : vector<16x32xbf16>, vector<16x32xbf16> -> vector<16x64xbf16>
    %c208 = arith.constant 208 : index
    %c0_23 = arith.constant 0 : index
    %79 = vector.load %arg2[%c208, %c0_23] : memref<472x64xbf16, #tpu.memory_space<vmem>>, vector<64x64xbf16>
    %cst_24 = arith.constant dense<0.000000e+00> : vector<16x64xf32>
    %80 = tpu.matmul %78, %79, %cst_24 {dimension_numbers = #tpu.dot_dimension_numbers<[1], [0], [0], [1], [0, 0, 1, 1], [], []>} : vector<16x64xbf16>, vector<64x64xbf16>, vector<16x64xf32> -> vector<16x64xf32>
    %c3 = arith.constant 3 : index
    %c0_25 = arith.constant 0 : index
    %81 = vector.load %arg3[%c3, %c0_25] : memref<10x64xf32, #tpu.memory_space<vmem>>, vector<1x64xf32>
    %82 = vector.broadcast %81 : vector<1x64xf32> to vector<16x64xf32>
    %83 = arith.addf %80, %82 : vector<16x64xf32>
    %84 = vector.extract_strided_slice %83 {offsets = [0, 0], sizes = [16, 32], strides = [1, 1]} : vector<16x64xf32> to vector<16x32xf32>
    %85 = arith.negf %84 : vector<16x32xf32>
    %86 = math.exp %85 : vector<16x32xf32>
    %cst_26 = arith.constant 1.000000e+00 : f32
    %87 = vector.broadcast %cst_26 : f32 to vector<16x32xf32>
    %88 = arith.addf %87, %86 : vector<16x32xf32>
    %89 = arith.divf %87, %88 : vector<16x32xf32>
    %90 = vector.extract_strided_slice %83 {offsets = [0, 32], sizes = [16, 32], strides = [1, 1]} : vector<16x64xf32> to vector<16x32xf32>
    %91 = arith.subf %90, %72 : vector<16x32xf32>
    %92 = arith.mulf %89, %91 : vector<16x32xf32>
    %93 = arith.addf %72, %92 : vector<16x32xf32>
    %c8_i32_27 = arith.constant 8 : i32
    %94 = tpu.dynamic_rotate %93 by %c8_i32_27 dim 0 : vector<16x32xf32>, i32 -> vector<16x32xf32>
    %cst_28 = arith.constant 0.000000e+00 : f32
    %95 = vector.broadcast %cst_28 : f32 to vector<16x32xf32>
    %96 = arith.select %30, %94, %95 : vector<16x32xi1>, vector<16x32xf32>
    %97 = arith.truncf %96 : vector<16x32xf32> to vector<16x32xbf16>
    %98 = arith.truncf %93 : vector<16x32xf32> to vector<16x32xbf16>
    %99 = tpu.concatenate %97, %98 in 1 : vector<16x32xbf16>, vector<16x32xbf16> -> vector<16x64xbf16>
    %c272 = arith.constant 272 : index
    %c0_29 = arith.constant 0 : index
    %100 = vector.load %arg2[%c272, %c0_29] : memref<472x64xbf16, #tpu.memory_space<vmem>>, vector<64x64xbf16>
    %cst_30 = arith.constant dense<0.000000e+00> : vector<16x64xf32>
    %101 = tpu.matmul %99, %100, %cst_30 {dimension_numbers = #tpu.dot_dimension_numbers<[1], [0], [0], [1], [0, 0, 1, 1], [], []>} : vector<16x64xbf16>, vector<64x64xbf16>, vector<16x64xf32> -> vector<16x64xf32>
    %c4 = arith.constant 4 : index
    %c0_31 = arith.constant 0 : index
    %102 = vector.load %arg3[%c4, %c0_31] : memref<10x64xf32, #tpu.memory_space<vmem>>, vector<1x64xf32>
    %103 = vector.broadcast %102 : vector<1x64xf32> to vector<16x64xf32>
    %104 = arith.addf %101, %103 : vector<16x64xf32>
    %105 = vector.extract_strided_slice %104 {offsets = [0, 0], sizes = [16, 32], strides = [1, 1]} : vector<16x64xf32> to vector<16x32xf32>
    %106 = arith.negf %105 : vector<16x32xf32>
    %107 = math.exp %106 : vector<16x32xf32>
    %cst_32 = arith.constant 1.000000e+00 : f32
    %108 = vector.broadcast %cst_32 : f32 to vector<16x32xf32>
    %109 = arith.addf %108, %107 : vector<16x32xf32>
    %110 = arith.divf %108, %109 : vector<16x32xf32>
    %111 = vector.extract_strided_slice %104 {offsets = [0, 32], sizes = [16, 32], strides = [1, 1]} : vector<16x64xf32> to vector<16x32xf32>
    %112 = arith.subf %111, %93 : vector<16x32xf32>
    %113 = arith.mulf %110, %112 : vector<16x32xf32>
    %114 = arith.addf %93, %113 : vector<16x32xf32>
    %115 = arith.truncf %114 : vector<16x32xf32> to vector<16x32xbf16>
    %c336 = arith.constant 336 : index
    %c0_33 = arith.constant 0 : index
    %116 = vector.load %arg2[%c336, %c0_33] : memref<472x64xbf16, #tpu.memory_space<vmem>>, vector<32x64xbf16>
    %cst_34 = arith.constant dense<0.000000e+00> : vector<16x64xf32>
    %117 = tpu.matmul %115, %116, %cst_34 {dimension_numbers = #tpu.dot_dimension_numbers<[1], [0], [0], [1], [0, 0, 1, 1], [], []>} : vector<16x32xbf16>, vector<32x64xbf16>, vector<16x64xf32> -> vector<16x64xf32>
    %c5 = arith.constant 5 : index
    %c0_35 = arith.constant 0 : index
    %118 = vector.load %arg3[%c5, %c0_35] : memref<10x64xf32, #tpu.memory_space<vmem>>, vector<1x64xf32>
    %119 = vector.broadcast %118 : vector<1x64xf32> to vector<16x64xf32>
    %120 = arith.addf %117, %119 : vector<16x64xf32>
    %121 = vector.extract_strided_slice %120 {offsets = [0, 0], sizes = [16, 32], strides = [1, 1]} : vector<16x64xf32> to vector<16x32xf32>
    %122 = arith.negf %121 : vector<16x32xf32>
    %123 = math.exp %122 : vector<16x32xf32>
    %cst_36 = arith.constant 1.000000e+00 : f32
    %124 = vector.broadcast %cst_36 : f32 to vector<16x32xf32>
    %125 = arith.addf %124, %123 : vector<16x32xf32>
    %126 = arith.divf %124, %125 : vector<16x32xf32>
    %127 = vector.extract_strided_slice %120 {offsets = [0, 32], sizes = [16, 32], strides = [1, 1]} : vector<16x64xf32> to vector<16x32xf32>
    %128 = arith.subf %127, %114 : vector<16x32xf32>
    %129 = arith.mulf %126, %128 : vector<16x32xf32>
    %130 = arith.addf %114, %129 : vector<16x32xf32>
    %131 = arith.truncf %130 : vector<16x32xf32> to vector<16x32xbf16>
    %c368 = arith.constant 368 : index
    %c0_37 = arith.constant 0 : index
    %132 = vector.load %arg2[%c368, %c0_37] : memref<472x64xbf16, #tpu.memory_space<vmem>>, vector<32x64xbf16>
    %cst_38 = arith.constant dense<0.000000e+00> : vector<16x64xf32>
    %133 = tpu.matmul %131, %132, %cst_38 {dimension_numbers = #tpu.dot_dimension_numbers<[1], [0], [0], [1], [0, 0, 1, 1], [], []>} : vector<16x32xbf16>, vector<32x64xbf16>, vector<16x64xf32> -> vector<16x64xf32>
    %c6 = arith.constant 6 : index
    %c0_39 = arith.constant 0 : index
    %134 = vector.load %arg3[%c6, %c0_39] : memref<10x64xf32, #tpu.memory_space<vmem>>, vector<1x64xf32>
    %135 = vector.broadcast %134 : vector<1x64xf32> to vector<16x64xf32>
    %136 = arith.addf %133, %135 : vector<16x64xf32>
    %137 = vector.extract_strided_slice %136 {offsets = [0, 0], sizes = [16, 32], strides = [1, 1]} : vector<16x64xf32> to vector<16x32xf32>
    %138 = arith.negf %137 : vector<16x32xf32>
    %139 = math.exp %138 : vector<16x32xf32>
    %cst_40 = arith.constant 1.000000e+00 : f32
    %140 = vector.broadcast %cst_40 : f32 to vector<16x32xf32>
    %141 = arith.addf %140, %139 : vector<16x32xf32>
    %142 = arith.divf %140, %141 : vector<16x32xf32>
    %143 = vector.extract_strided_slice %136 {offsets = [0, 32], sizes = [16, 32], strides = [1, 1]} : vector<16x64xf32> to vector<16x32xf32>
    %144 = arith.subf %143, %130 : vector<16x32xf32>
    %145 = arith.mulf %142, %144 : vector<16x32xf32>
    %146 = arith.addf %130, %145 : vector<16x32xf32>
    %c400 = arith.constant 400 : index
    %c0_41 = arith.constant 0 : index
    %147 = vector.load %arg2[%c400, %c0_41] : memref<472x64xbf16, #tpu.memory_space<vmem>>, vector<32x32xbf16>
    %c432 = arith.constant 432 : index
    %c0_42 = arith.constant 0 : index
    %148 = vector.load %arg2[%c432, %c0_42] : memref<472x64xbf16, #tpu.memory_space<vmem>>, vector<32x32xbf16>
    %149 = arith.truncf %146 : vector<16x32xf32> to vector<16x32xbf16>
    %cst_43 = arith.constant dense<0.000000e+00> : vector<16x32xf32>
    %150 = tpu.matmul %149, %147, %cst_43 {dimension_numbers = #tpu.dot_dimension_numbers<[1], [0], [0], [1], [0, 0, 1, 1], [], []>} : vector<16x32xbf16>, vector<32x32xbf16>, vector<16x32xf32> -> vector<16x32xf32>
    %c7 = arith.constant 7 : index
    %c0_44 = arith.constant 0 : index
    %151 = vector.load %arg3[%c7, %c0_44] : memref<10x64xf32, #tpu.memory_space<vmem>>, vector<1x32xf32>
    %152 = vector.broadcast %151 : vector<1x32xf32> to vector<16x32xf32>
    %153 = arith.addf %150, %152 : vector<16x32xf32>
    %cst_45 = arith.constant 0.000000e+00 : f32
    %154 = vector.broadcast %cst_45 : f32 to vector<16x32xf32>
    %155 = arith.maximumf %153, %154 : vector<16x32xf32>
    %156 = arith.truncf %155 : vector<16x32xf32> to vector<16x32xbf16>
    %cst_46 = arith.constant dense<0.000000e+00> : vector<16x32xf32>
    %157 = tpu.matmul %156, %148, %cst_46 {dimension_numbers = #tpu.dot_dimension_numbers<[1], [0], [0], [1], [0, 0, 1, 1], [], []>} : vector<16x32xbf16>, vector<32x32xbf16>, vector<16x32xf32> -> vector<16x32xf32>
    %c8 = arith.constant 8 : index
    %c0_47 = arith.constant 0 : index
    %158 = vector.load %arg3[%c8, %c0_47] : memref<10x64xf32, #tpu.memory_space<vmem>>, vector<1x32xf32>
    %159 = vector.broadcast %158 : vector<1x32xf32> to vector<16x32xf32>
    %160 = arith.addf %157, %159 : vector<16x32xf32>
    %cst_48 = arith.constant 0.000000e+00 : f32
    %161 = vector.broadcast %cst_48 : f32 to vector<16x32xf32>
    %162 = arith.maximumf %160, %161 : vector<16x32xf32>
    %c464 = arith.constant 464 : index
    %c0_49 = arith.constant 0 : index
    %163 = vector.load %arg2[%c464, %c0_49] : memref<472x64xbf16, #tpu.memory_space<vmem>>, vector<1x32xbf16>
    %164 = arith.truncf %162 : vector<16x32xf32> to vector<16x32xbf16>
    %cst_50 = arith.constant dense<0.000000e+00> : vector<1x16xf32>
    %165 = tpu.matmul %163, %164, %cst_50 {dimension_numbers = #tpu.dot_dimension_numbers<[1], [1], [0], [0], [0, 0, 1, 0], [], []>} : vector<1x32xbf16>, vector<16x32xbf16>, vector<1x16xf32> -> vector<1x16xf32>
    %c9 = arith.constant 9 : index
    %c0_51 = arith.constant 0 : index
    %166 = vector.load %arg3[%c9, %c0_51] : memref<10x64xf32, #tpu.memory_space<vmem>>, vector<1x1xf32>
    %167 = vector.broadcast %166 : vector<1x1xf32> to vector<1x16xf32>
    %168 = arith.addf %165, %167 : vector<1x16xf32>
    %c0_52 = arith.constant 0 : index
    %c0_53 = arith.constant 0 : index
    %c0_54 = arith.constant 0 : index
    %169 = vector.load %arg4[%c0_52, %c0_53, %c0_54] : memref<1x1x16xf32, #tpu.memory_space<vmem>>, vector<1x1x16xf32>
    %170 = vector.shape_cast %169 : vector<1x1x16xf32> to vector<1x16xf32>
    %171 = vector.shape_cast %168 : vector<1x16xf32> to vector<1x1x16xf32>
    tpu.vector_store %arg4[%c0_52, %c0_53, %c0_54], %171 {strides = array<i32>} : memref<1x1x16xf32, #tpu.memory_space<vmem>>, vector<1x1x16xf32>,
    return
  }
  func.func @transform_0(%arg0: i32) -> (i32, i32) {
    %c0_i32 = arith.constant 0 : i32
    %c0_i32_0 = arith.constant 0 : i32
    return %arg0, %c0_i32 : i32, i32
  }
  func.func @transform_1(%arg0: i32) -> (i32, i32) {
    %c0_i32 = arith.constant 0 : i32
    %c0_i32_0 = arith.constant 0 : i32
    %c0_i32_1 = arith.constant 0 : i32
    return %c0_i32, %c0_i32_0 : i32, i32
  }
  func.func @transform_2(%arg0: i32) -> (i32, i32) {
    %c0_i32 = arith.constant 0 : i32
    %c0_i32_0 = arith.constant 0 : i32
    %c0_i32_1 = arith.constant 0 : i32
    return %c0_i32, %c0_i32_0 : i32, i32
  }
  func.func @transform_3(%arg0: i32) -> (i32, i32, i32) {
    %c0_i32 = arith.constant 0 : i32
    %c0_i32_0 = arith.constant 0 : i32
    %c0_i32_1 = arith.constant 0 : i32
    return %arg0, %c0_i32, %c0_i32_0 : i32, i32, i32
  }
}

</mosaic_0001>

<bundles_post_ra>
// kernel: _forward_impl.1
= control target key start
LH: loop header
LB: loop body
LE: loop exit
PB: predicated region body
PF: predicated region fallthrough
CT: control target
= control target key end

     0   :  { %8 = vsyncpa [#allocation3], 0  ;;  %s2034_s0 = inlined_call_operand.vmem [shape: bf16[32,80], index: 0, kind: input, shape index: {}]   ;;  %s2035_s1 = inlined_call_operand.vmem [shape: bf16[472,64], index: 1, kind: input, shape index: {}]   ;;  %s2036_s2 = inlined_call_operand.vmem [shape: f32[10,64], index: 2, kind: input, shape index: {}]   ;;  %s2037_s3 = inlined_call_operand.hbm [shape: f32[2,1,16], index: 3, kind: output, shape index: {}]  }
   0x1   :  { %10 = vsyncpa [#allocation3 + $0x1], 0  ;;  %s1699_s12 = smov 0   ;;  %s1701_s13 = smov 0  }
   0x2   :  { %s1703_s14 = smov 0   ;;  %s1705_s15 = smov 0  }
   0x3 LB: > { %s1720_s16 = sadd.s32 4294967295, %s1671_s15   ;;  %s1276_s17 = sadd.s32 4294967294, %s1671_s15   ;;  %s1671_s15 = sphi %s1705_s15, %s2043_s15   ;;  %s1667_s14 = sphi %s1703_s14, %s2042_s14   ;;  %s1663_s13 = sphi %s1701_s13, %s2041_s13   ;;  %s1659_s12 = sphi %s1699_s12, %s2040_s12  }
   0x4   : > { %s1724_s18 = sadd.s32 1, %s1671_s15   ;;  %s91_s19 = sadd.s32 1, %s1667_s14 }
   0x5   : > { %s88_s20 = ssub.s32 %s1671_s15, %s1724_s18  ;;  %p101_p0 = scmp.ne.s32.totalorder %s1667_s14, %s1663_s13 }
   0x6   : > { %p89_p1 = scmp.eq.s32.totalorder %s88_s20, 0  ;;  %p102_p2 = scmp.eq.s32.totalorder %s1720_s16, 1 }
   0x7   : > { %p107_p3 = scmp.ne.s32.totalorder %s1663_s13, %s1659_s12  ;;  %p108_p4 = scmp.eq.s32.totalorder %s1276_s17, 1 }
   0x8   : > { %s1735_s21 = scalar_select %p89_p1, %s1667_s14, %s91_s19  }
   0x9   : > { %p1737_p5 = por %p102_p2, %p101_p0  ;;  %p1741_p6 = por %p108_p4, %p107_p3 }
   0xa   : > { %p1279_p7 = scmp.ge.s32.totalorder %s1671_s15, 1  ;;  %p141_p8 = scmp.lt.s32.totalorder %s1671_s15, 3 }
   0xc   : > { %p142_p9 = pnand %p1279_p7, %p141_p8 }
   0xd   : > { %v1531_v0 = vld [vmem:[%s2035_s1] sm:$0xff] (!%p142_p9)   ;;  %v1673_v1 = vmov (!%p142_p9), 0.0   ;;  %v1532_v2 = vld [vmem:[%s2035_s1 + $0x8] sm:$0xff] (!%p142_p9)   ;;  %vm1674_vm0 = vmmov (!%p142_p9), 0   ;;  %s1280_s28 = sshll.u32 (!%p142_p9), %s1720_s16, 1  ;;  %v1533_v3 = vld [vmem:[%s2035_s1 + $0x10] sm:$0xff] (!%p142_p9)   ;;  %v268_v19 = vlaneseq (!%p142_p9) }
   0xe   : > { %145 = sbr.rel (%p142_p9) target bundleno = 3426 (0xd62), region = 32  ;;  %1386 = vmatprep.subr.bf16.mxu0 (!%p142_p9), %v1673_v1  ;;  %1400 = vmatprep.subr.bf16.mxu1 (!%p142_p9), %v1673_v1  ;;  %p165_p10 = scmp.lt.s32.totalorder (!%p142_p9), %s1280_s28, 3  ;;  %v1534_v4 = vld [vmem:[%s2035_s1 + $0x18] sm:$0xff] (!%p142_p9)   ;;  %vm223_vm1 = vcmask (!%p142_p9), 654336   ;;  %v1535_v5 = vld [vmem:[%s2035_s1 + $0x20] sm:$0xff] (!%p142_p9)   ;;  %v1537_v7 = vld [vmem:[%s2035_s1 + $0x28] sm:$0xff] (!%p142_p9)  }
   0xf   : > { %1387 = vmatpush3.bf16.msra.mxu0 (!%p142_p9), %v1531_v0  ;;  %1396 = vmatprep.mubr.msk.bf16.mxu0 (!%p142_p9), %vm1674_vm0, %v1673_v1  ;;  %v1538_v8 = vld [vmem:[%s2035_s1 + $0x30] sm:$0xff] (!%p142_p9)   ;;  %v1539_v9 = vld [vmem:[%s2035_s1 + $0x38] sm:$0xff] (!%p142_p9)   ;;  %v1540_v10 = vld [vmem:[%s2035_s1 + $0x40] sm:$0xff] (!%p142_p9)   ;;  %v1809_v20 = vshrl.u32 (!%p142_p9), %v268_v19, 7  ;;  %vm315_vm4 = vcmask (!%p142_p9), 261120   ;;  %vm356_vm5 = vcmask (!%p142_p9), 523264  }
  0x10   : > { %1388 = vmatprep.subr.bf16.mxu0 (!%p142_p9), %v1673_v1  ;;  %1408 = vmatprep.mubr.msk.bf16.mxu1 (!%p142_p9), %vm1674_vm0, %v1673_v1  ;;  %v1282_v11 = vld [vmem:[%s2036_s2] ss:$0 sm:$0xff] (!%p142_p9)  ;;  %v1290_v30 = vld [vmem:[%s2036_s2 + $0x1] ss:$0 sm:$0xff] (!%p142_p9)  ;;  %v1541_v40 = vld [vmem:[%s2035_s1 + $0x48] sm:$0xff] (!%p142_p9)   ;;  %s1676_s9 = smov (!%p142_p9), 96  }
  0x11   : > { %1401 = vmatpush3.bf16.msra.mxu1 (!%p142_p9), %v1537_v7  ;;  %v1813_v22 = vand.u32 (!%p142_p9), 15, %v1809_v20  ;;  %vm305_vm2 = vcmp.lt.s32.totalorder (!%p142_p9), %v1809_v20, 1  ;;  %v1542_v42 = vld [vmem:[%s2035_s1 + $0x50] sm:$0xff] (!%p142_p9)   ;;  %v1543_v43 = vld [vmem:[%s2035_s1 + $0x58] sm:$0xff] (!%p142_p9)   ;;  %v1544_v50 = vld [vmem:[%s2035_s1 + $0x60] sm:$0xff] (!%p142_p9)   ;;  %vm436_vm6 = vcmp.lt.s32.totalorder (!%p142_p9), %v1809_v20, 2 }
  0x12   : > { %1402 = vmatprep.subr.bf16.mxu1 (!%p142_p9), %v1673_v1  ;;  %vm565_vm8 = vcmp.lt.s32.totalorder (!%p142_p9), %v1809_v20, 4  ;;  %s162_s25 = sand.u32 (!%p142_p9), 1, %s1663_s13   ;;  %s1343_s26 = sshll.u32 (!%p142_p9), %s1720_s16, 4  ;;  %vm1206_vm10 = vcmask (!%p142_p9), 122880  }
  0x13   : > { %1389 = vmatpush3.bf16.msra.mxu0 (!%p142_p9), %v1532_v2  ;;  %vm295_vm3 = vcmp.ge.s32.totalorder (!%p142_p9), %v1813_v22, 1  ;;  %vm297_vm7 = vcmp.ge.s32.totalorder (!%p142_p9), %v1813_v22, 2  ;;  %vm299_vm9 = vcmp.ge.s32.totalorder (!%p142_p9), %v1813_v22, 4  ;;  %s163_s27 = scalar_lea.vmem (!%p142_p9), [#allocation2], %s162_s25  ;;  %s1209_s16 = scalar_lea.sflag (!%p142_p9), [#allocation3], %s162_s25 }
  0x14   : > { %1390 = vmatprep.subr.bf16.mxu0 (!%p142_p9), %v1673_v1  ;;  %s1678_s5 = smov (!%p142_p9), [#allocation2]  }
  0x15   : > { %s2045_s28 = smov (!%p165_p10, %s1280_s28), 3  ;;  %1403 = vmatpush3.bf16.msra.mxu1 %v1538_v8  ;;  %s1613_s6 = sshll.u32 %s1678_s5, 4  ;;  %s1614_s6 = int_to_ptr.vmem [resolvable:$false] %s1613_s6 }
  0x16   : > { %s1281_s4 = sshll.u32 %s2045_s28, 2  ;;  %1404 = vmatprep.subr.bf16.mxu1 %v1673_v1  ;;  %s1221_s28 = sshll.u32 %s163_s27, 4  ;;  %s1994_s28 = int_to_ptr.vmem [resolvable:$true] %s1221_s28 }
  0x17   : > { %s168_s7 = scalar_lea.vmem %s2034_s0, %s1281_s4  ;;  %1391 = vmatpush3.bf16.msra.mxu0 %v1533_v3  ;;  %s1675_s4 = smov 32  }
  0x18   : > { %1392 = vmatprep.subr.bf16.mxu0 %v1673_v1  ;;  %v1536_v6 = vld [vmem:[%s168_s7] sm:$0xff]   ;;  %s1615_s7 = scalar_lea.vmem %s1614_s6, 32  ;;  %p1616_p0 = scmp.lt.s32.totalorder %s1994_s28, %s1614_s6 }
  0x19   : > { %1405 = vmatpush3.bf16.msra.mxu1 %v1539_v9 }
  0x1a   : > { %1406 = vmatprep.subr.bf16.mxu1 %v1673_v1 }
  0x1b   : > { %1393 = vmatpush3.bf16.msra.mxu0 %v1534_v4 }
  0x1c   : > { %1394 = vmatprep.subr.bf16.mxu0 %v1673_v1 }
  0x1d   : > { %1407 = vmatpush3.bf16.msra.mxu1 %v1540_v10 }
  0x1e   : > { %1412 = vmatprep.subr.bf16.mxu1 %v1673_v1 }
  0x1f   : > { %1395 = vmatpush3.bf16.msra.mxu0 %v1535_v5  ;;  %v1298_v5 = vld [vmem:[%s2036_s2 + $0x2] ss:$0 sm:$0xff] }
  0x20   : > { %1424 = vmatprep.subr.bf16.mxu0 %v1673_v1 }
  0x22   : > { %1397 = vmatmul.mubr.msk.bf16.vlgmr.msra.gmra.mrb[0].mxu0 %vm223_vm1, %v1536_v6 }
  0x23   : > { %1432 = vmatprep.mubr.msk.bf16.mxu0 %vm1674_vm0, %v1673_v1 }
  0xf5   : > { %v261_v12 = vpop.f32.mrb[0].mxu0 }
  0xf6   : > { %v1398_v13 = vpop.f32.mrb[1].mxu0  ;;  %v1798_v15 = vadd.f32 %v1282_v11, %v261_v12 }
  0xf7   : > { %v264_v14 = vpop.f32.mrb[2].mxu0 }
  0xf8   : > { %v1800_v16 = vadd.f32 %v1282_v11, %v264_v14  ;;  %v1399_v17 = vpop.f32.mrb[3].mxu0  ;;  %v303_v23 = vrot.slane %v1798_v15, 7 }
  0xf9   : > { %v1546_v17 = vld [vmem:[%s2035_s1 + $0x70] sm:$0xff]  }
  0xfa   : > { %416 = vrot.lane.b32.xlu1 %v1800_v16, %s1675_s4  ;;  %v311_v18 = vpack.c.bf16 %v1800_v16, %v1798_v15  ;;  %v304_v21 = vrot.slane %v1800_v16, 7 }
  0xfc   : > { %313 = vrot.lane.b32.xlu0 %v311_v18, %s1675_s4  ;;  %v307_v24 = vsel %vm305_vm2, %v304_v21, %v303_v23  ;;  %v306_v25 = vsel %vm305_vm2, %v303_v23, %v304_v21  ;;  %v1547_v18 = vld [vmem:[%s2035_s1 + $0x78] sm:$0xff]  }
  0xfd   : > { %v308_v26 = vsel %vm295_vm3, %v307_v24, 0.0 }
  0xfe   : > { %v310_v27 = vpack.c.bf16 %v306_v25, %v308_v26 }
 0x100   : > { %414 = vrot.lane.b32.xlu0 %v1798_v15, %s1675_s4 }
 0x16c   : > { %v417_v39 = vpop.permute.xlu1 %416 }
 0x16e   : > { %v314_v28 = vpop.permute.xlu0 %313 }
 0x16f   : > { %v318_v29 = vsel %vm315_vm4, %v310_v27, %v314_v28  ;;  %v1548_v27 = vld [vmem:[%s2035_s1 + $0x80] sm:$0xff]  }
 0x170   : > { %1409 = vmatmul.mubr.msk.bf16.vlgmr.msra.gmra.mrb[0].mxu1 %vm356_vm5, %v318_v29 }
 0x171   : > { %1420 = vmatprep.mubr.msk.bf16.mxu1 %vm1674_vm0, %v1673_v1  ;;  %1413 = vmatpush3.bf16.msra.mxu1 %v1541_v40 }
 0x172   : > { %v415_v34 = vpop.permute.xlu0 %414  ;;  %1414 = vmatprep.subr.bf16.mxu1 %v1673_v1 }
 0x175   : > { %1415 = vmatpush3.bf16.msra.mxu1 %v1542_v42 }
 0x176   : > { %1416 = vmatprep.subr.bf16.mxu1 %v1673_v1 }
 0x179   : > { %1417 = vmatpush3.bf16.msra.mxu1 %v1543_v43 }
 0x17a   : > { %1418 = vmatprep.subr.bf16.mxu1 %v1673_v1 }
 0x17d   : > { %1419 = vmatpush3.bf16.msra.mxu1 %v1544_v50 }
 0x17e   : > { %1436 = vmatprep.subr.bf16.mxu1 %v1673_v1 }
 0x243   : > { %v393_v31 = vpop.f32.mrb[0].mxu1 }
 0x244   : > { %v394_v32 = vadd.f32 %v1290_v30, %v393_v31  ;;  %v1410_v33 = vpop.f32.mrb[1].mxu1 }
 0x245   : > { %v396_v35 = vpop.f32.mrb[2].mxu1 }
 0x246   : > { %v420_v36 = vsub.f32 %v394_v32, %v415_v34  ;;  %v397_v37 = vadd.f32 %v1290_v30, %v396_v35  ;;  %v1411_v38 = vpop.f32.mrb[3].mxu1  ;;  %v1296_v44 = vmul.f32 -1.442695, %v394_v32 }
 0x248   : > { %v421_v41 = vsub.f32 %v397_v37, %v417_v39  ;;  %424 = vrot.lane.b32.xlu1 %v420_v36, %s1676_s9  ;;  %v1297_v45 = vmul.f32 -1.442695, %v397_v37  ;;  %1561 = vpow2.f32 %v1296_v44 }
 0x24a   : > { %426 = vrot.lane.b32.xlu0 %v421_v41, %s1676_s9  ;;  %1563 = vpow2.f32 %v1297_v45  ;;  %v1306_v45 = vld [vmem:[%s2036_s2 + $0x3] ss:$0 sm:$0xff] }
 0x252   : > { %v1562_v46 = vpop.eup %1561 }
 0x253   : > { %v406_v48 = vadd.f32 1.0, %v1562_v46 }
 0x254   : > { %v1564_v47 = vpop.eup %1563 }
 0x255   : > { %v407_v49 = vadd.f32 1.0, %v1564_v47  ;;  %1565 = vrcp.f32 %v406_v48 }
 0x257   : > { %1567 = vrcp.f32 %v407_v49 }
 0x25f   : > { %v1566_v51 = vpop.eup %1565 }
 0x261   : > { %v1568_v54 = vpop.eup %1567 }
 0x2ba   : > { %v425_v52 = vpop.permute.xlu1 %424 }
 0x2bb   : > { %v430_v53 = vmul.f32 %v1566_v51, %v425_v52 }
 0x2bc   : > { %v427_v55 = vpop.permute.xlu0 %426 }
 0x2bd   : > { %v432_v56 = vadd.f32 %v430_v53, %v1798_v15  ;;  %v431_v57 = vmul.f32 %v1568_v54, %v427_v55  ;;  %v1545_v15 = vld [vmem:[%s2035_s1 + $0x68] sm:$0xff]   ;;  %v1550_v55 = vld [vmem:[%s2035_s1 + $0x90] sm:$0xff]  }
 0x2be   : > { %1425 = vmatpush3.bf16.msra.mxu0 %v1545_v15  ;;  %v1549_v53 = vld [vmem:[%s2035_s1 + $0x88] sm:$0xff]   ;;  %v1314_v15 = vld [vmem:[%s2036_s2 + $0x4] ss:$0 sm:$0xff] }
 0x2bf   : > { %v433_v58 = vadd.f32 %v431_v57, %v1800_v16  ;;  %543 = vrot.lane.b32.xlu0 %v432_v56, %s1675_s4  ;;  %v434_v61 = vrot.slane %v432_v56, 6  ;;  %1426 = vmatprep.subr.bf16.mxu0 %v1673_v1 }
 0x2c1   : > { %v442_v59 = vpack.c.bf16 %v433_v58, %v432_v56  ;;  %v435_v60 = vrot.slane %v433_v58, 6 }
 0x2c2   : > { %1427 = vmatpush3.bf16.msra.mxu0 %v1546_v17 }
 0x2c3   : > { %444 = vrot.lane.b32.xlu1 %v442_v59, %s1675_s4  ;;  %v438_v62 = vsel %vm436_vm6, %v435_v60, %v434_v61  ;;  %v437_v63 = vsel %vm436_vm6, %v434_v61, %v435_v60  ;;  %1428 = vmatprep.subr.bf16.mxu0 %v1673_v1 }
 0x2c4   : > { %v439_v0 = vsel %vm297_vm7, %v438_v62, 0.0 }
 0x2c5   : > { %v441_v2 = vpack.c.bf16 %v437_v63, %v439_v0  ;;  %v1552_v63 = vld [vmem:[%s2035_s1 + $0xa0] sm:$0xff]  }
 0x2c6   : > { %1429 = vmatpush3.bf16.msra.mxu0 %v1547_v18 }
 0x2c7   : > { %545 = vrot.lane.b32.xlu1 %v433_v58, %s1675_s4  ;;  %1430 = vmatprep.subr.bf16.mxu0 %v1673_v1 }
 0x2ca   : > { %1431 = vmatpush3.bf16.msra.mxu0 %v1548_v27 }
 0x2cb   : > { %1448 = vmatprep.subr.bf16.mxu0 %v1673_v1 }
 0x331   : > { %v544_v9 = vpop.permute.xlu0 %543 }
 0x335   : > { %v445_v3 = vpop.permute.xlu1 %444 }
 0x336   : > { %v448_v4 = vsel %vm315_vm4, %v441_v2, %v445_v3 }
 0x337   : > { %1421 = vmatmul.mubr.msk.bf16.vlgmr.msra.gmra.mrb[4].mxu1 %vm356_vm5, %v448_v4 }
 0x338   : > { %1444 = vmatprep.mubr.msk.bf16.mxu1 %vm1674_vm0, %v1673_v1  ;;  %1437 = vmatpush3.bf16.msra.mxu1 %v1549_v53 }
 0x339   : > { %v546_v14 = vpop.permute.xlu1 %545  ;;  %1438 = vmatprep.subr.bf16.mxu1 %v1673_v1 }
 0x33c   : > { %1439 = vmatpush3.bf16.msra.mxu1 %v1550_v55 }
 0x33d   : > { %1440 = vmatprep.subr.bf16.mxu1 %v1673_v1 }
 0x40a   : > { %v522_v6 = vpop.f32.mrb[4].mxu1 }
 0x40b   : > { %v523_v7 = vadd.f32 %v1298_v5, %v522_v6  ;;  %v1422_v8 = vpop.f32.mrb[5].mxu1 }
 0x40c   : > { %v525_v10 = vpop.f32.mrb[6].mxu1 }
 0x40d   : > { %v549_v11 = vsub.f32 %v523_v7, %v544_v9  ;;  %v526_v12 = vadd.f32 %v1298_v5, %v525_v10  ;;  %v1423_v13 = vpop.f32.mrb[7].mxu1  ;;  %v1304_v19 = vmul.f32 -1.442695, %v523_v7 }
 0x40e   : > { %v1553_v13 = vld [vmem:[%s2035_s1 + $0xa8] sm:$0xff]  }
 0x40f   : > { %v550_v16 = vsub.f32 %v526_v12, %v546_v14  ;;  %553 = vrot.lane.b32.xlu0 %v549_v11, %s1676_s9  ;;  %v1305_v21 = vmul.f32 -1.442695, %v526_v12  ;;  %1569 = vpow2.f32 %v1304_v19  ;;  %v1554_v14 = vld [vmem:[%s2035_s1 + $0xb0] sm:$0xff]  }
 0x411   : > { %555 = vrot.lane.b32.xlu1 %v550_v16, %s1676_s9  ;;  %1571 = vpow2.f32 %v1305_v21 }
 0x419   : > { %v1570_v23 = vpop.eup %1569 }
 0x41a   : > { %v535_v25 = vadd.f32 1.0, %v1570_v23 }
 0x41b   : > { %v1572_v24 = vpop.eup %1571 }
 0x41c   : > { %v536_v26 = vadd.f32 1.0, %v1572_v24  ;;  %1573 = vrcp.f32 %v535_v25 }
 0x41e   : > { %1575 = vrcp.f32 %v536_v26 }
 0x426   : > { %v1574_v28 = vpop.eup %1573 }
 0x428   : > { %v1576_v31 = vpop.eup %1575 }
 0x481   : > { %v554_v29 = vpop.permute.xlu0 %553 }
 0x482   : > { %v559_v30 = vmul.f32 %v1574_v28, %v554_v29 }
 0x483   : > { %v556_v32 = vpop.permute.xlu1 %555 }
 0x484   : > { %v561_v33 = vadd.f32 %v559_v30, %v432_v56  ;;  %v560_v34 = vmul.f32 %v1576_v31, %v556_v32  ;;  %v1551_v56 = vld [vmem:[%s2035_s1 + $0x98] sm:$0xff]  }
 0x485   : > { %1441 = vmatpush3.bf16.msra.mxu1 %v1551_v56 }
 0x486   : > { %v562_v35 = vadd.f32 %v560_v34, %v433_v58  ;;  %672 = vrot.lane.b32.xlu1 %v561_v33, %s1675_s4  ;;  %v563_v38 = vrot.slane %v561_v33, 4  ;;  %1442 = vmatprep.subr.bf16.mxu1 %v1673_v1 }
 0x488   : > { %v571_v36 = vpack.c.bf16 %v562_v35, %v561_v33  ;;  %v564_v37 = vrot.slane %v562_v35, 4 }
 0x489   : > { %1443 = vmatpush3.bf16.msra.mxu1 %v1552_v63 }
 0x48a   : > { %573 = vrot.lane.b32.xlu0 %v571_v36, %s1675_s4  ;;  %v567_v39 = vsel %vm565_vm8, %v564_v37, %v563_v38  ;;  %v566_v40 = vsel %vm565_vm8, %v563_v38, %v564_v37  ;;  %1464 = vmatprep.subr.bf16.mxu1 %v1673_v1 }
 0x48b   : > { %v568_v41 = vsel %vm299_vm9, %v567_v39, 0.0 }
 0x48c   : > { %v570_v42 = vpack.c.bf16 %v566_v40, %v568_v41 }
 0x48e   : > { %674 = vrot.lane.b32.xlu0 %v562_v35, %s1675_s4 }
 0x4f8   : > { %v673_v22 = vpop.permute.xlu1 %672 }
 0x4fc   : > { %v574_v43 = vpop.permute.xlu0 %573 }
 0x4fd   : > { %v577_v44 = vsel %vm315_vm4, %v570_v42, %v574_v43  ;;  %v1555_v43 = vld [vmem:[%s2035_s1 + $0xb8] sm:$0xff]  }
 0x4fe   : > { %1433 = vmatmul.mubr.msk.bf16.vlgmr.msra.gmra.mrb[4].mxu0 %vm356_vm5, %v577_v44  ;;  %v1556_v44 = vld [vmem:[%s2035_s1 + $0xc0] sm:$0xff]  }
 0x4ff   : > { %1452 = vmatprep.mubr.msk.bf16.mxu0 %vm1674_vm0, %v1673_v1  ;;  %1449 = vmatpush3.bf16.msra.mxu0 %v1553_v13 }
 0x500   : > { %v675_v52 = vpop.permute.xlu0 %674  ;;  %1450 = vmatprep.subr.bf16.mxu0 %v1673_v1 }
 0x503   : > { %1451 = vmatpush3.bf16.msra.mxu0 %v1554_v14 }
 0x504   : > { %1456 = vmatprep.subr.bf16.mxu0 %v1673_v1 }
 0x5d1   : > { %v651_v20 = vpop.f32.mrb[4].mxu0 }
 0x5d2   : > { %v652_v46 = vadd.f32 %v1306_v45, %v651_v20  ;;  %v1434_v47 = vpop.f32.mrb[5].mxu0 }
 0x5d3   : > { %v654_v48 = vpop.f32.mrb[6].mxu0 }
 0x5d4   : > { %v678_v49 = vsub.f32 %v652_v46, %v673_v22  ;;  %v655_v50 = vadd.f32 %v1306_v45, %v654_v48  ;;  %v1435_v51 = vpop.f32.mrb[7].mxu0  ;;  %v1312_v57 = vmul.f32 -1.442695, %v652_v46  ;;  %v1322_v45 = vld [vmem:[%s2036_s2 + $0x5] ss:$0 sm:$0xff] }
 0x5d6   : > { %v679_v54 = vsub.f32 %v655_v50, %v675_v52  ;;  %682 = vrot.lane.b32.xlu1 %v678_v49, %s1676_s9  ;;  %v1313_v58 = vmul.f32 -1.442695, %v655_v50  ;;  %1577 = vpow2.f32 %v1312_v57 }
 0x5d8   : > { %684 = vrot.lane.b32.xlu0 %v679_v54, %s1676_s9  ;;  %1579 = vpow2.f32 %v1313_v58 }
 0x5e0   : > { %v1578_v59 = vpop.eup %1577 }
 0x5e1   : > { %v664_v61 = vadd.f32 1.0, %v1578_v59 }
 0x5e2   : > { %v1580_v60 = vpop.eup %1579 }
 0x5e3   : > { %v665_v62 = vadd.f32 1.0, %v1580_v60  ;;  %1581 = vrcp.f32 %v664_v61 }
 0x5e5   : > { %1583 = vrcp.f32 %v665_v62 }
 0x5ed   : > { %v1582_v0 = vpop.eup %1581 }
 0x5ef   : > { %v1584_v4 = vpop.eup %1583 }
 0x648   : > { %v683_v2 = vpop.permute.xlu1 %682 }
 0x649   : > { %v688_v3 = vmul.f32 %v1582_v0, %v683_v2 }
 0x64a   : > { %v685_v5 = vpop.permute.xlu0 %684 }
 0x64b   : > { %v690_v6 = vadd.f32 %v688_v3, %v561_v33  ;;  %v689_v7 = vmul.f32 %v1584_v4, %v685_v5 }
 0x64d   : > { %v691_v8 = vadd.f32 %v689_v7, %v562_v35  ;;  %796 = vrot.lane.b32.xlu0 %v690_v6, %s1675_s4  ;;  %v694_v10 = vpack.c.bf16 %v690_v6, %v1673_v1  ;;  %v1558_v7 = vld [vmem:[%s2035_s1 + $0xd0] sm:$0xff]  }
 0x64f   : > { %v695_v9 = vpack.c.bf16 %v691_v8, %v690_v6 }
 0x651   : > { %697 = vrot.lane.b32.xlu1 %v695_v9, %s1675_s4 }
 0x655   : > { %798 = vrot.lane.b32.xlu1 %v691_v8, %s1675_s4 }
 0x6bf   : > { %v797_v19 = vpop.permute.xlu0 %796 }
 0x6c3   : > { %v698_v11 = vpop.permute.xlu1 %697 }
 0x6c4   : > { %v701_v12 = vsel %vm315_vm4, %v694_v10, %v698_v11 }
 0x6c5   : > { %1445 = vmatmul.mubr.msk.bf16.vlgmr.msra.gmra.mrb[8].mxu1 %vm356_vm5, %v701_v12 }
 0x6c6   : > { %1468 = vmatprep.mubr.msk.bf16.mxu1 %vm1674_vm0, %v1673_v1 }
 0x6c7   : > { %v799_v26 = vpop.permute.xlu1 %798 }
 0x798   : > { %v775_v16 = vpop.f32.mrb[8].mxu1 }
 0x799   : > { %v776_v17 = vadd.f32 %v1314_v15, %v775_v16  ;;  %v1446_v18 = vpop.f32.mrb[9].mxu1 }
 0x79a   : > { %v778_v21 = vpop.f32.mrb[10].mxu1 }
 0x79b   : > { %v802_v23 = vsub.f32 %v776_v17, %v797_v19  ;;  %v779_v24 = vadd.f32 %v1314_v15, %v778_v21  ;;  %v1447_v25 = vpop.f32.mrb[11].mxu1  ;;  %v1320_v28 = vmul.f32 -1.442695, %v776_v17 }
 0x79d   : > { %v803_v27 = vsub.f32 %v779_v24, %v799_v26  ;;  %806 = vrot.lane.b32.xlu0 %v802_v23, %s1676_s9  ;;  %v1321_v29 = vmul.f32 -1.442695, %v779_v24  ;;  %1585 = vpow2.f32 %v1320_v28 }
 0x79f   : > { %808 = vrot.lane.b32.xlu1 %v803_v27, %s1676_s9  ;;  %1587 = vpow2.f32 %v1321_v29 }
 0x7a7   : > { %v1586_v30 = vpop.eup %1585 }
 0x7a8   : > { %v788_v32 = vadd.f32 1.0, %v1586_v30 }
 0x7a9   : > { %v1588_v31 = vpop.eup %1587 }
 0x7aa   : > { %v789_v33 = vadd.f32 1.0, %v1588_v31  ;;  %1589 = vrcp.f32 %v788_v32 }
 0x7ac   : > { %1591 = vrcp.f32 %v789_v33 }
 0x7b4   : > { %v1590_v34 = vpop.eup %1589 }
 0x7b6   : > { %v1592_v37 = vpop.eup %1591 }
 0x80f   : > { %v807_v35 = vpop.permute.xlu0 %806 }
 0x810   : > { %v812_v36 = vmul.f32 %v1590_v34, %v807_v35 }
 0x811   : > { %v809_v38 = vpop.permute.xlu1 %808 }
 0x812   : > { %v814_v39 = vadd.f32 %v812_v36, %v690_v6  ;;  %v813_v40 = vmul.f32 %v1592_v37, %v809_v38  ;;  %v1557_v6 = vld [vmem:[%s2035_s1 + $0xc8] sm:$0xff]   ;;  %v1559_v36 = vld [vmem:[%s2035_s1 + $0xd8] sm:$0xff]   ;;  %v1560_v37 = vld [vmem:[%s2035_s1 + $0xe0] sm:$0xff]  }
 0x813   : > { %1465 = vmatpush3.bf16.msra.mxu1 %v1557_v6  ;;  %v1334_v38 = vld [vmem:[%s2036_s2 + $0x7] ss:$0 sm:$0xff] }
 0x814   : > { %v815_v41 = vadd.f32 %v813_v40, %v691_v8  ;;  %896 = vrot.lane.b32.xlu0 %v814_v39, %s1675_s4  ;;  %1466 = vmatprep.subr.bf16.mxu1 %v1673_v1  ;;  %v1328_v8 = vld [vmem:[%s2036_s2 + $0x6] ss:$0 sm:$0xff] }
 0x816   : > { %v816_v42 = vpack.c.bf16 %v815_v41, %v814_v39  ;;  %898 = vrot.lane.b32.xlu1 %v815_v41, %s1675_s4 }
 0x817   : > { %1467 = vmatpush3.bf16.msra.mxu1 %v1558_v7 }
 0x818   : > { %1453 = vmatmul.mubr.msk.bf16.vlgmr.msra.gmra.mrb[8].mxu0 %vm315_vm4, %v816_v42  ;;  %1480 = vmatprep.subr.bf16.mxu1 %v1673_v1 }
 0x819   : > { %1460 = vmatprep.mubr.msk.bf16.mxu0 %vm1674_vm0, %v1673_v1  ;;  %1457 = vmatpush3.bf16.msra.mxu0 %v1555_v43 }
 0x81a   : > { %1458 = vmatprep.subr.bf16.mxu0 %v1673_v1 }
 0x81d   : > { %1459 = vmatpush3.bf16.msra.mxu0 %v1556_v44 }
 0x81e   : > { %1472 = vmatprep.subr.bf16.mxu0 %v1673_v1 }
 0x886   : > { %v897_v22 = vpop.permute.xlu0 %896 }
 0x888   : > { %v899_v52 = vpop.permute.xlu1 %898 }
 0x8eb   : > { %v875_v20 = vpop.f32.mrb[8].mxu0 }
 0x8ec   : > { %v876_v46 = vadd.f32 %v1322_v45, %v875_v20  ;;  %v1454_v47 = vpop.f32.mrb[9].mxu0 }
 0x8ed   : > { %v878_v48 = vpop.f32.mrb[10].mxu0  ;;  %v1677_v47 = vmov 0  }
 0x8ee   : > { %v902_v49 = vsub.f32 %v876_v46, %v897_v22  ;;  %v879_v50 = vadd.f32 %v1322_v45, %v878_v48  ;;  %v1455_v51 = vpop.f32.mrb[11].mxu0  ;;  %v1326_v54 = vmul.f32 -1.442695, %v876_v46  ;;  %1530 = vset.pattern.permute.xlu0 %v1677_v47  ;;  %v1338_v22 = vld [vmem:[%s2036_s2 + $0x8] ss:$0 sm:$0xff] }
 0x8f0   : > { %v903_v53 = vsub.f32 %v879_v50, %v899_v52  ;;  %906 = vrot.lane.b32.xlu0 %v902_v49, %s1676_s9  ;;  %v1327_v55 = vmul.f32 -1.442695, %v879_v50  ;;  %1593 = vpow2.f32 %v1326_v54 }
 0x8f2   : > { %908 = vrot.lane.b32.xlu1 %v903_v53, %s1676_s9  ;;  %1595 = vpow2.f32 %v1327_v55 }
 0x8fa   : > { %v1594_v56 = vpop.eup %1593 }
 0x8fb   : > { %v888_v58 = vadd.f32 1.0, %v1594_v56 }
 0x8fc   : > { %v1596_v57 = vpop.eup %1595 }
 0x8fd   : > { %v889_v59 = vadd.f32 1.0, %v1596_v57  ;;  %1597 = vrcp.f32 %v888_v58  ;;  %v1152_v58 = vld [vmem:[%s2035_s1 + $0xe8] sm:$0x1] }
 0x8ff   : > { %1599 = vrcp.f32 %v889_v59 }
 0x907   : > { %v1598_v60 = vpop.eup %1597 }
 0x909   : > { %v1600_v63 = vpop.eup %1599 }
 0x962   : > { %v907_v61 = vpop.permute.xlu0 %906 }
 0x963   : > { %v912_v62 = vmul.f32 %v1598_v60, %v907_v61 }
 0x964   : > { %v909_v0 = vpop.permute.xlu1 %908 }
 0x965   : > { %v914_v2 = vadd.f32 %v912_v62, %v814_v39  ;;  %v913_v3 = vmul.f32 %v1600_v63, %v909_v0 }
 0x967   : > { %v915_v4 = vadd.f32 %v913_v3, %v815_v41  ;;  %996 = vrot.lane.b32.xlu0 %v914_v2, %s1675_s4 }
 0x969   : > { %v916_v5 = vpack.c.bf16 %v915_v4, %v914_v2  ;;  %998 = vrot.lane.b32.xlu1 %v915_v4, %s1675_s4  ;;  %s1992_s4 = scalar_lea.hbm %s2037_s3, %s1343_s26 }
 0x96b   : > { %1461 = vmatmul.mubr.msk.bf16.vlgmr.msra.gmra.mrb[12].mxu0 %vm315_vm4, %v916_v5 }
 0x96c   : > { %1476 = vmatprep.mubr.msk.bf16.mxu0 %vm1674_vm0, %v1673_v1  ;;  %1473 = vmatpush3.bf16.msra.mxu0 %v1559_v36 }
 0x96d   : > { %1474 = vmatprep.subr.bf16.mxu0 %v1673_v1 }
 0x970   : > { %1475 = vmatpush3.bf16.msra.mxu0 %v1560_v37 }
 0x9d9   : > { %v997_v12 = vpop.permute.xlu0 %996 }
 0x9db   : > { %v999_v17 = vpop.permute.xlu1 %998 }
 0xa3e   : > { %v975_v9 = vpop.f32.mrb[12].mxu0 }
 0xa3f   : > { %v976_v10 = vadd.f32 %v1328_v8, %v975_v9  ;;  %v1462_v11 = vpop.f32.mrb[13].mxu0 }
 0xa40   : > { %v978_v13 = vpop.f32.mrb[14].mxu0 }
 0xa41   : > { %v1002_v14 = vsub.f32 %v976_v10, %v997_v12  ;;  %v979_v15 = vadd.f32 %v1328_v8, %v978_v13  ;;  %v1463_v16 = vpop.f32.mrb[15].mxu0  ;;  %v1332_v19 = vmul.f32 -1.442695, %v976_v10 }
 0xa43   : > { %v1003_v18 = vsub.f32 %v979_v15, %v999_v17  ;;  %1006 = vrot.lane.b32.xlu0 %v1002_v14, %s1676_s9  ;;  %v1333_v21 = vmul.f32 -1.442695, %v979_v15  ;;  %1601 = vpow2.f32 %v1332_v19 }
 0xa45   : > { %1008 = vrot.lane.b32.xlu1 %v1003_v18, %s1676_s9  ;;  %1603 = vpow2.f32 %v1333_v21  ;;  %s1609_s9 = scalar_lea.vmem %s1994_s28, 16 }
 0xa46   : > { %p1610_p11 = scmp.ne.s32.totalorder %s1994_s28, %s1609_s9  ;;  %p1617_p1 = scmp.lt.s32.totalorder %s1615_s7, %s1609_s9 }
 0xa48   : > { %p1611_p12 = pnand %p1610_p11, %p1737_p5  ;;  %p1618_p2 = por %p1617_p1, %p1616_p0 }
 0xa4a   : > { %p1612_p13 = pneg %p1611_p12 }
 0xa4c   : > { %p1619_p3 = pnand %p1618_p2, %p1612_p13 }
 0xa4d   : > { %v1602_v23 = vpop.eup %1601 }
 0xa4e   : > { %v988_v25 = vadd.f32 1.0, %v1602_v23 }
 0xa4f   : > { %v1604_v24 = vpop.eup %1603 }
 0xa50   : > { %v989_v26 = vadd.f32 1.0, %v1604_v24  ;;  %1605 = vrcp.f32 %v988_v25 }
 0xa52   : > { %1607 = vrcp.f32 %v989_v26 }
 0xa5a   : > { %v1606_v27 = vpop.eup %1605 }
 0xa5c   : > { %v1608_v30 = vpop.eup %1607 }
 0xab5   : > { %v1007_v28 = vpop.permute.xlu0 %1006 }
 0xab6   : > { %v1012_v29 = vmul.f32 %v1606_v27, %v1007_v28 }
 0xab7   : > { %v1009_v31 = vpop.permute.xlu1 %1008 }
 0xab8   : > { %v1013_v32 = vmul.f32 %v1608_v30, %v1009_v31  ;;  %v1014_v33 = vadd.f32 %v1012_v29, %v914_v2 }
 0xaba   : > { %v1015_v34 = vadd.f32 %v1013_v32, %v915_v4 }
 0xabc   : > { %v1024_v35 = vpack.c.bf16 %v1015_v34, %v1014_v33 }
 0xabe   : > { %1469 = vmatmul.mubr.msk.bf16.vlgmr.msra.gmra.mrb[12].mxu1 %vm315_vm4, %v1024_v35 }
 0xabf   : > { %1482 = vmatprep.mubr.msk.bf16.mxu1 %vm1674_vm0, %v1673_v1  ;;  %v1154_v1 = vld [vmem:[%s2036_s2 + $0x9] sm:$0x1] }
 0xac0   : > { %1157 = vperm.xlu0 %1530, %v1154_v1  }
 0xb3f   : > { %v1158_v59 = vpop.permute.xlu0 %1157 }
 0xb91   : > { %v1079_v39 = vpop.f32.mrb[12].mxu1 }
 0xb92   : > { %v1080_v40 = vadd.f32 %v1334_v38, %v1079_v39  ;;  %v1470_v41 = vpop.f32.mrb[13].mxu1 }
 0xb93   : > { %v1082_v42 = vpop.f32.mrb[14].mxu1 }
 0xb94   : > { %v1083_v43 = vadd.f32 %v1334_v38, %v1082_v42  ;;  %v1471_v44 = vpop.f32.mrb[15].mxu1  ;;  %v1086_v45 = vmax.f32 %v1080_v40, 0.0 }
 0xb96   : > { %v1087_v20 = vmax.f32 %v1083_v43, 0.0 }
 0xb98   : > { %v1088_v46 = vpack.c.bf16 %v1087_v20, %v1086_v45 }
 0xb9a   : > { %1477 = vmatmul.mubr.msk.bf16.vlgmr.msra.gmra.mrb[16].mxu0 %vm315_vm4, %v1088_v46 }
 0xc6d   : > { %v1143_v48 = vpop.f32.mrb[16].mxu0 }
 0xc6e   : > { %v1144_v49 = vadd.f32 %v1338_v22, %v1143_v48  ;;  %v1478_v50 = vpop.f32.mrb[17].mxu0 }
 0xc6f   : > { %v1146_v51 = vpop.f32.mrb[18].mxu0 }
 0xc70   : > { %v1147_v52 = vadd.f32 %v1338_v22, %v1146_v51  ;;  %v1479_v53 = vpop.f32.mrb[19].mxu0  ;;  %v1150_v54 = vmax.f32 %v1144_v49, 0.0 }
 0xc72   : > { %v1151_v55 = vmax.f32 %v1147_v52, 0.0 }
 0xc74   : > { %v1153_v56 = vpack.c.bf16 %v1151_v55, %v1150_v54 }
 0xc76   : > { %v1164_v57 = vsel %vm315_vm4, %v1153_v56, 0 }
 0xc77   : > { %1481 = vmatpush3.bf16.xpose.msra.mxu1 %v1164_v57 }
 0xc7e   : > { %1483 = vmatmul.mubr.msk.bf16.vlgmr.msra.gmra.mrb[16].mxu1 %vm315_vm4, %v1152_v58 }
 0xd51   : > { %v1200_v60 = vpop.f32.mrb[16].mxu1 }
 0xd52   : > { %v1201_v61 = vadd.f32 %v1200_v60, %v1158_v59  ;;  %v1484_v62 = vpop.f32.mrb[17].mxu1 }
 0xd53   : > { %v1203_v63 = vpop.f32.mrb[18].mxu1 }
 0xd54   : > { %v1485_v0 = vpop.f32.mrb[19].mxu1  ;;  %1207 = vst.msk [vmem:[%s163_s27] sm:$0x1] %vm1206_vm10, %v1201_v61 }
 0xd55   : > { %1622 = shalt.err (!%p1619_p3)
}
 0xd56   : > { %s1623_s8 = scalar_lea.hbm %s1992_s4, 16  ;;  %s1627_s17 = scalar_lea.hbm %s2037_s3, 32 }
 0xd57   : > { %p1624_p4 = scmp.ne.s32.totalorder %s1992_s4, %s1623_s8  ;;  %p1628_p9 = scmp.lt.u32.totalorder %s1992_s4, %s2037_s3 }
 0xd58   : > { %p1629_p10 = scmp.lt.u32.totalorder %s1627_s17, %s1623_s8  ;;  %p1631_p12 = scmp.lt.u32.totalorder %s1623_s8, %s1992_s4 }
 0xd59   : > { %p1625_p7 = pnand %p1624_p4, %p1737_p5 }
 0xd5a   : > { %p1630_p11 = por %p1629_p10, %p1628_p9 }
 0xd5b   : > { %p1626_p8 = pneg %p1625_p7 }
 0xd5c   : > { %p1632_p13 = por %p1631_p12, %p1630_p11 }
 0xd5e   : > { %p1633_p0 = pnand %p1632_p13, %p1626_p8 }
 0xd60   : > { %1636 = shalt.err (!%p1633_p0)
}
 0xd61   : > { %1486 = dma.vmem_to_hbm [thread:$0]  (%p1737_p5), %s1994_s28, 16, %s1992_s4, %s1209_s16  }
 0xd62 PF: > { %p1492_p1 = scmp.ge.s32.totalorder %s1671_s15, 2  ;;  %s1233_s24 = sand.u32 1, %s1659_s12  }
 0xd63   : > { %s1234_s25 = scalar_lea.sflag [#allocation3], %s1233_s24 }
 0xd64   : > { %p1489_p2 = pnand %p1492_p1, %p1741_p6 }
 0xd66   : > { %1654 = dma.done.wait (!%p1489_p2), %s1234_s25, 16  }
 0xd67   : > { %1656 = vsyncadd (!%p1489_p2), %s1234_s25, 4294967280  ;;  %p13_p3 = scmp.ge.s32.totalorder %s1724_s18, 4   ;;  %s2040_s12 = smov %s1663_s13 }
 0xd68   : > { %s2041_s13 = smov %s1667_s14  ;;  %s2042_s14 = smov %s1735_s21 }
 0xd69   : > { %s2043_s15 = smov %s1724_s18  ;;  %15 = sbr.rel (!%p13_p3) target bundleno = 3 (0x3), region = 67 }
 0xd70   :  { %1238 = vsyncpa [#allocation3], 1 }
 0xd71   :  { %1240 = vsyncpa [#allocation3 + $0x1], 1 }

</bundles_post_ra>
